<compile_context>
chip_gen: v7x
topology: tpu7x:2x2x1
jax: 0.10.0
libtpu: 0.0.40
codegen_flags: <defaults>
</compile_context>

<pallas_src>
import math

import jax
import jax.numpy as jnp
import numpy as np
from jax.experimental import pallas as pl
from jax.experimental.pallas import tpu as pltpu

# ---- model dims (small, consistent with the module) ----
B = 2          # batch
S = 8          # sequence length
H = 32         # hidden_size
NUM_HEADS = 4
HEAD = H // NUM_HEADS
MLP_DIM = 64
EPS = 1e-6
LANES = 128    # lane width of the packed parameter slab

# ---- parameter-slab row offsets (single (SLAB_ROWS, 128) f32 array) ----
ROW_WQKV = 0                          # (H, 3H)   q|k|v, LN1 gamma + 1/sqrt(HEAD) folded in
ROW_WO   = ROW_WQKV + H               # (H, H)    output projection (original layout)
ROW_W1   = ROW_WO + H                 # (H, MLP_DIM)  LN2 gamma folded in
ROW_W2   = ROW_W1 + H                 # (MLP_DIM, H)
ROW_BQKV = ROW_W2 + MLP_DIM           # (1, 3H)   LN1 beta + 1/sqrt(HEAD) folded in
ROW_BO   = ROW_BQKV + 1               # (1, H)
ROW_B1   = ROW_BQKV + 2               # (1, MLP_DIM)  LN2 beta folded in
ROW_B2   = ROW_BQKV + 3               # (1, H)
ROW_MASK = ((ROW_BQKV + 4 + 7) // 8) * 8   # (B*S, B*S) block-diagonal mask, 8-aligned
SLAB_ROWS = ROW_MASK + B * S          # = 184


def _gelu_exact(x):
    # PyTorch nn.GELU() default = exact erf-based GELU
    return 0.5 * x * (1.0 + jax.lax.erf(x * (1.0 / math.sqrt(2.0))))


def _layernorm(v, g, b):
    mu = jnp.mean(v, axis=-1, keepdims=True)
    var = jnp.mean((v - mu) ** 2, axis=-1, keepdims=True)
    return (v - mu) * jax.lax.rsqrt(var + EPS) * g + b


def block_kernel(x_ref, p_ref, o_ref):
    x = x_ref[...]                                       # (B*S, H) f32

    # ---- LN1 (gamma/beta folded into the packed QKV weights/bias) ----
    mu = jnp.mean(x, axis=-1, keepdims=True)
    var = jnp.mean((x - mu) ** 2, axis=-1, keepdims=True)
    xhat = (x - mu) * jax.lax.rsqrt(var + EPS)           # (B*S, H)

    # ---- fused QKV projection: ONE matmul, 128 output lanes (96 valid) ----
    qkv = (jnp.dot(xhat, p_ref[ROW_WQKV:ROW_WQKV + H, :],
                   preferred_element_type=jnp.float32)
           + p_ref[ROW_BQKV:ROW_BQKV + 1, :])            # (B*S, 128)

    # block-diagonal mask: 0 on own batch, -1e30 cross-batch (hoisted out of loop)
    mask = p_ref[ROW_MASK:ROW_MASK + B * S, :][:, 0:B * S]   # (B*S, B*S)

    # ---- attention: both batch elements at once per head ----
    ctx_heads = []
    for hd in range(NUM_HEADS):                          # static unroll (4)
        q_h = qkv[:, hd * HEAD:(hd + 1) * HEAD]                  # (B*S, HEAD) lane slice
        k_h = qkv[:, H + hd * HEAD:H + (hd + 1) * HEAD]
        v_h = qkv[:, 2 * H + hd * HEAD:2 * H + (hd + 1) * HEAD]
        # contract last dims of q and k -> no explicit transpose (no XLU vxpose)
        s = jax.lax.dot_general(q_h, k_h, (((1,), (1,)), ((), ())),
                                preferred_element_type=jnp.float32) + mask   # (B*S, B*S)
        s = s - jnp.max(s, axis=-1, keepdims=True)
        e = jnp.exp(s)
        p = e * pl.reciprocal(jnp.sum(e, axis=-1, keepdims=True), approx=True)
        ctx_heads.append(jnp.dot(p, v_h, preferred_element_type=jnp.float32))
    ctx = jnp.concatenate(ctx_heads, axis=-1)            # (B*S, H) lane-major heads

    # ---- fused output projection (original wo layout) + residual ----
    proj = (jnp.dot(ctx, p_ref[ROW_WO:ROW_WO + H, :],
                    preferred_element_type=jnp.float32)
            + p_ref[ROW_BO:ROW_BO + 1, :])               # (B*S, 128), 32 valid lanes
    attn = x + proj[:, 0:H]                              # (B*S, H)

    # ---- LN2 (gamma/beta folded into fc1 weights/bias) ----
    mu2 = jnp.mean(attn, axis=-1, keepdims=True)
    var2 = jnp.mean((attn - mu2) ** 2, axis=-1, keepdims=True)
    xhat2 = (attn - mu2) * jax.lax.rsqrt(var2 + EPS)

    # ---- MLP ----
    m = (jnp.dot(xhat2, p_ref[ROW_W1:ROW_W1 + H, :],
                 preferred_element_type=jnp.float32)
         + p_ref[ROW_B1:ROW_B1 + 1, :])[:, 0:MLP_DIM]    # (B*S, MLP_DIM)
    m = _gelu_exact(m)
    m = (jnp.dot(m, p_ref[ROW_W2:ROW_W2 + MLP_DIM, :],
                 preferred_element_type=jnp.float32)
         + p_ref[ROW_B2:ROW_B2 + 1, :])[:, 0:H]          # (B*S, H)

    o_ref[...] = (m + attn).astype(o_ref.dtype)


def pack_block_params(p):
    """One-time host-side repack into a single lane-dense (SLAB_ROWS, 128) slab.
    Folds 1/sqrt(HEAD) into q, LN1 gamma/beta into Wqkv/bqkv, LN2 gamma/beta
    into fc1, and includes the block-diagonal attention mask."""
    scale = 1.0 / math.sqrt(HEAD)

    wqkv0 = jnp.concatenate([p["wq"] * scale, p["wk"], p["wv"]], axis=1)   # (H, 3H)
    bqkv0 = jnp.concatenate([p["bq"] * scale, p["bk"], p["bv"]], axis=1)   # (1, 3H)
    # fold LN1: (xhat*g + b) @ W + bias == xhat @ (g^T * W) + (b @ W + bias)
    bqkv = p["ln1_b"] @ wqkv0 + bqkv0
    wqkv = p["ln1_g"].reshape(H, 1) * wqkv0
    # fold LN2 into fc1
    b1 = p["ln2_b"] @ p["w1"] + p["b1"]
    w1 = p["ln2_g"].reshape(H, 1) * p["w1"]

    bid = jnp.arange(B * S) // S
    mask = jnp.where(bid[:, None] == bid[None, :], 0.0, -1e30).astype(jnp.float32)

    slab = jnp.zeros((SLAB_ROWS, LANES), jnp.float32)

    def put(s, row, a):
        return s.at[row:row + a.shape[0], 0:a.shape[1]].set(a)

    slab = put(slab, ROW_WQKV, wqkv)
    slab = put(slab, ROW_WO, p["wo"])
    slab = put(slab, ROW_W1, w1)
    slab = put(slab, ROW_W2, p["w2"])
    slab = put(slab, ROW_BQKV, bqkv)
    slab = put(slab, ROW_BO, p["bo"])
    slab = put(slab, ROW_B1, b1)
    slab = put(slab, ROW_B2, p["b2"])
    slab = put(slab, ROW_MASK, mask)
    return slab


def block_forward(x, slab):
    """x: (B, S, H) float32; slab = pack_block_params(params).
    Returns (y, None) mirroring Block.forward (vis=False)."""
    x2 = x.reshape(B * S, H)   # fuse batch into sublanes; single kernel invocation
    y2 = pl.pallas_call(
        block_kernel,
        out_shape=jax.ShapeDtypeStruct((B * S, H), x.dtype),
        in_specs=[pl.BlockSpec(memory_space=pltpu.MemorySpace.VMEM),
                  pl.BlockSpec(memory_space=pltpu.MemorySpace.VMEM)],
        out_specs=pl.BlockSpec(memory_space=pltpu.MemorySpace.VMEM),
    )(x2, slab)
    return y2.reshape(B, S, H), None


def init_params(key):
    ks = jax.random.split(key, 8)

    def lin(k, din, dout, wstd=0.02, bstd=0.02):
        kw, kb = jax.random.split(k)
        w = jax.random.normal(kw, (din, dout), jnp.float32) * wstd
        b = jax.random.normal(kb, (1, dout), jnp.float32) * bstd
        return w, b

    wq, bq = lin(ks[0], H, H)
    wk, bk = lin(ks[1], H, H)
    wv, bv = lin(ks[2], H, H)
    wo, bo = lin(ks[3], H, H)
    # MLP: xavier-uniform weights, bias ~ N(0, 1e-6) per module init
    lim1 = math.sqrt(6.0 / (H + MLP_DIM))
    w1 = jax.random.uniform(ks[4], (H, MLP_DIM), jnp.float32, -lim1, lim1)
    b1 = jax.random.normal(ks[5], (1, MLP_DIM), jnp.float32) * 1e-6
    lim2 = math.sqrt(6.0 / (MLP_DIM + H))
    w2 = jax.random.uniform(ks[6], (MLP_DIM, H), jnp.float32, -lim2, lim2)
    b2 = jax.random.normal(ks[7], (1, H), jnp.float32) * 1e-6
    return {
        "ln1_g": jnp.ones((1, H), jnp.float32), "ln1_b": jnp.zeros((1, H), jnp.float32),
        "wq": wq, "bq": bq, "wk": wk, "bk": bk, "wv": wv, "bv": bv, "wo": wo, "bo": bo,
        "ln2_g": jnp.ones((1, H), jnp.float32), "ln2_b": jnp.zeros((1, H), jnp.float32),
        "w1": w1, "b1": b1, "w2": w2, "b2": b2,
    }


def block_reference(x, p):
    """Pure-JAX reference of Block.forward (eval mode, vis=False)."""
    h = x
    xn = _layernorm(x, p["ln1_g"], p["ln1_b"])
    q = xn @ p["wq"] + p["bq"]
    k = xn @ p["wk"] + p["bk"]
    v = xn @ p["wv"] + p["bv"]

    def split(t):  # (B,S,H) -> (B,nh,S,hd)
        return t.reshape(B, S, NUM_HEADS, HEAD).transpose(0, 2, 1, 3)

    qh, kh, vh = split(q), split(k), split(v)
    scores = jnp.einsum("bhqd,bhkd->bhqk", qh, kh) / math.sqrt(HEAD)
    probs = jax.nn.softmax(scores, axis=-1)
    ctx = jnp.einsum("bhqk,bhkd->bhqd", probs, vh).transpose(0, 2, 1, 3).reshape(B, S, H)
    x = ctx @ p["wo"] + p["bo"] + h
    h2 = x
    xn2 = _layernorm(x, p["ln2_g"], p["ln2_b"])
    m = _gelu_exact(xn2 @ p["w1"] + p["b1"])
    m = m @ p["w2"] + p["b2"]
    return m + h2


if __name__ == "__main__":
    key = jax.random.PRNGKey(0)
    kx, kp = jax.random.split(key)
    x = jax.random.normal(kx, (B, S, H), jnp.float32)
    params = init_params(kp)
    slab = pack_block_params(params)   # one-time weight repack into one lane-dense slab

    y, weights = block_forward(x, slab)
    y = jax.block_until_ready(y)

    y_ref = block_reference(x, params)
    np.testing.assert_allclose(np.asarray(y), np.asarray(y_ref), rtol=1e-3, atol=1e-3)
    assert weights is None  # vis=False
    print("KERNEL_OK")
</pallas_src>

<mosaic_0001>
module attributes {stable_mosaic.version = 11 : i64} {
  func.func @block_kernel(%arg0: memref<16x32xf32, #tpu.memory_space<vmem>>, %arg1: memref<184x128xf32, #tpu.memory_space<vmem>>, %arg2: memref<16x32xf32, #tpu.memory_space<vmem>>) attributes {dimension_semantics = [], scalar_prefetch = 0 : i64, scratch_operands = 0 : i64, tpu.core_type = #tpu.core_type<tc>} {
    %c0 = arith.constant 0 : index
    %c0_0 = arith.constant 0 : index
    %0 = vector.load %arg0[%c0, %c0_0] : memref<16x32xf32, #tpu.memory_space<vmem>>, vector<16x32xf32>
    %cst = arith.constant dense<0.000000e+00> : vector<16xf32>
    %1 = vector.multi_reduction <add>, %0, %cst [1] : vector<16x32xf32> to vector<16xf32>
    %2 = vector.shape_cast %1 : vector<16xf32> to vector<16x1xf32>
    %cst_1 = arith.constant 3.200000e+01 : f32
    %3 = vector.broadcast %cst_1 : f32 to vector<16x1xf32>
    %4 = arith.divf %2, %3 : vector<16x1xf32>
    %5 = vector.broadcast %4 : vector<16x1xf32> to vector<16x32xf32>
    %6 = arith.subf %0, %5 : vector<16x32xf32>
    %7 = arith.mulf %6, %6 : vector<16x32xf32>
    %cst_2 = arith.constant dense<0.000000e+00> : vector<16xf32>
    %8 = vector.multi_reduction <add>, %7, %cst_2 [1] : vector<16x32xf32> to vector<16xf32>
    %9 = vector.shape_cast %8 : vector<16xf32> to vector<16x1xf32>
    %cst_3 = arith.constant 3.200000e+01 : f32
    %10 = vector.broadcast %cst_3 : f32 to vector<16x1xf32>
    %11 = arith.divf %9, %10 : vector<16x1xf32>
    %12 = vector.broadcast %4 : vector<16x1xf32> to vector<16x32xf32>
    %13 = arith.subf %0, %12 : vector<16x32xf32>
    %cst_4 = arith.constant 9.99999997E-7 : f32
    %14 = vector.broadcast %cst_4 : f32 to vector<16x1xf32>
    %15 = arith.addf %11, %14 : vector<16x1xf32>
    %16 = math.rsqrt %15 : vector<16x1xf32>
    %17 = vector.broadcast %16 : vector<16x1xf32> to vector<16x32xf32>
    %18 = arith.mulf %13, %17 : vector<16x32xf32>
    %c0_5 = arith.constant 0 : index
    %c0_6 = arith.constant 0 : index
    %19 = vector.load %arg1[%c0_5, %c0_6] : memref<184x128xf32, #tpu.memory_space<vmem>>, vector<32x128xf32>
    %cst_7 = arith.constant dense<0.000000e+00> : vector<16x128xf32>
    %20 = tpu.matmul %18, %19, %cst_7 {dimension_numbers = #tpu.dot_dimension_numbers<[1], [0], [0], [1], [0, 0, 1, 1], [], []>} : vector<16x32xf32>, vector<32x128xf32>, vector<16x128xf32> -> vector<16x128xf32>
    %c160 = arith.constant 160 : index
    %c0_8 = arith.constant 0 : index
    %21 = vector.load %arg1[%c160, %c0_8] : memref<184x128xf32, #tpu.memory_space<vmem>>, vector<1x128xf32>
    %22 = vector.broadcast %21 : vector<1x128xf32> to vector<16x128xf32>
    %23 = arith.addf %20, %22 : vector<16x128xf32>
    %c168 = arith.constant 168 : index
    %c0_9 = arith.constant 0 : index
    %24 = vector.load %arg1[%c168, %c0_9] : memref<184x128xf32, #tpu.memory_space<vmem>>, vector<16x128xf32>
    %25 = vector.extract_strided_slice %24 {offsets = [0, 0], sizes = [16, 16], strides = [1, 1]} : vector<16x128xf32> to vector<16x16xf32>
    %26 = vector.extract_strided_slice %23 {offsets = [0, 0], sizes = [16, 8], strides = [1, 1]} : vector<16x128xf32> to vector<16x8xf32>
    %27 = vector.extract_strided_slice %23 {offsets = [0, 32], sizes = [16, 8], strides = [1, 1]} : vector<16x128xf32> to vector<16x8xf32>
    %28 = vector.extract_strided_slice %23 {offsets = [0, 64], sizes = [16, 8], strides = [1, 1]} : vector<16x128xf32> to vector<16x8xf32>
    %cst_10 = arith.constant dense<0.000000e+00> : vector<16x16xf32>
    %29 = tpu.matmul %26, %27, %cst_10 {dimension_numbers = #tpu.dot_dimension_numbers<[1], [1], [0], [0], [0, 0, 1, 0], [], []>} : vector<16x8xf32>, vector<16x8xf32>, vector<16x16xf32> -> vector<16x16xf32>
    %30 = arith.addf %29, %25 : vector<16x16xf32>
    %cst_11 = arith.constant dense<0xFF800000> : vector<16xf32>
    %31 = vector.multi_reduction <maximumf>, %30, %cst_11 [1] : vector<16x16xf32> to vector<16xf32>
    %32 = vector.shape_cast %31 : vector<16xf32> to vector<16x1xf32>
    %33 = vector.broadcast %32 : vector<16x1xf32> to vector<16x16xf32>
    %34 = arith.subf %30, %33 : vector<16x16xf32>
    %35 = math.exp %34 : vector<16x16xf32>
    %cst_12 = arith.constant dense<0.000000e+00> : vector<16xf32>
    %36 = vector.multi_reduction <add>, %35, %cst_12 [1] : vector<16x16xf32> to vector<16xf32>
    %37 = vector.shape_cast %36 : vector<16xf32> to vector<16x1xf32>
    %38 = tpu.reciprocal %37 {approx = true} : vector<16x1xf32> -> vector<16x1xf32>
    %39 = vector.broadcast %38 : vector<16x1xf32> to vector<16x16xf32>
    %40 = arith.mulf %35, %39 : vector<16x16xf32>
    %cst_13 = arith.constant dense<0.000000e+00> : vector<16x8xf32>
    %41 = tpu.matmul %40, %28, %cst_13 {dimension_numbers = #tpu.dot_dimension_numbers<[1], [0], [0], [1], [0, 0, 1, 1], [], []>} : vector<16x16xf32>, vector<16x8xf32>, vector<16x8xf32> -> vector<16x8xf32>
    %42 = vector.extract_strided_slice %23 {offsets = [0, 8], sizes = [16, 8], strides = [1, 1]} : vector<16x128xf32> to vector<16x8xf32>
    %43 = vector.extract_strided_slice %23 {offsets = [0, 40], sizes = [16, 8], strides = [1, 1]} : vector<16x128xf32> to vector<16x8xf32>
    %44 = vector.extract_strided_slice %23 {offsets = [0, 72], sizes = [16, 8], strides = [1, 1]} : vector<16x128xf32> to vector<16x8xf32>
    %cst_14 = arith.constant dense<0.000000e+00> : vector<16x16xf32>
    %45 = tpu.matmul %42, %43, %cst_14 {dimension_numbers = #tpu.dot_dimension_numbers<[1], [1], [0], [0], [0, 0, 1, 0], [], []>} : vector<16x8xf32>, vector<16x8xf32>, vector<16x16xf32> -> vector<16x16xf32>
    %46 = arith.addf %45, %25 : vector<16x16xf32>
    %cst_15 = arith.constant dense<0xFF800000> : vector<16xf32>
    %47 = vector.multi_reduction <maximumf>, %46, %cst_15 [1] : vector<16x16xf32> to vector<16xf32>
    %48 = vector.shape_cast %47 : vector<16xf32> to vector<16x1xf32>
    %49 = vector.broadcast %48 : vector<16x1xf32> to vector<16x16xf32>
    %50 = arith.subf %46, %49 : vector<16x16xf32>
    %51 = math.exp %50 : vector<16x16xf32>
    %cst_16 = arith.constant dense<0.000000e+00> : vector<16xf32>
    %52 = vector.multi_reduction <add>, %51, %cst_16 [1] : vector<16x16xf32> to vector<16xf32>
    %53 = vector.shape_cast %52 : vector<16xf32> to vector<16x1xf32>
    %54 = tpu.reciprocal %53 {approx = true} : vector<16x1xf32> -> vector<16x1xf32>
    %55 = vector.broadcast %54 : vector<16x1xf32> to vector<16x16xf32>
    %56 = arith.mulf %51, %55 : vector<16x16xf32>
    %cst_17 = arith.constant dense<0.000000e+00> : vector<16x8xf32>
    %57 = tpu.matmul %56, %44, %cst_17 {dimension_numbers = #tpu.dot_dimension_numbers<[1], [0], [0], [1], [0, 0, 1, 1], [], []>} : vector<16x16xf32>, vector<16x8xf32>, vector<16x8xf32> -> vector<16x8xf32>
    %58 = vector.extract_strided_slice %23 {offsets = [0, 16], sizes = [16, 8], strides = [1, 1]} : vector<16x128xf32> to vector<16x8xf32>
    %59 = vector.extract_strided_slice %23 {offsets = [0, 48], sizes = [16, 8], strides = [1, 1]} : vector<16x128xf32> to vector<16x8xf32>
    %60 = vector.extract_strided_slice %23 {offsets = [0, 80], sizes = [16, 8], strides = [1, 1]} : vector<16x128xf32> to vector<16x8xf32>
    %cst_18 = arith.constant dense<0.000000e+00> : vector<16x16xf32>
    %61 = tpu.matmul %58, %59, %cst_18 {dimension_numbers = #tpu.dot_dimension_numbers<[1], [1], [0], [0], [0, 0, 1, 0], [], []>} : vector<16x8xf32>, vector<16x8xf32>, vector<16x16xf32> -> vector<16x16xf32>
    %62 = arith.addf %61, %25 : vector<16x16xf32>
    %cst_19 = arith.constant dense<0xFF800000> : vector<16xf32>
    %63 = vector.multi_reduction <maximumf>, %62, %cst_19 [1] : vector<16x16xf32> to vector<16xf32>
    %64 = vector.shape_cast %63 : vector<16xf32> to vector<16x1xf32>
    %65 = vector.broadcast %64 : vector<16x1xf32> to vector<16x16xf32>
    %66 = arith.subf %62, %65 : vector<16x16xf32>
    %67 = math.exp %66 : vector<16x16xf32>
    %cst_20 = arith.constant dense<0.000000e+00> : vector<16xf32>
    %68 = vector.multi_reduction <add>, %67, %cst_20 [1] : vector<16x16xf32> to vector<16xf32>
    %69 = vector.shape_cast %68 : vector<16xf32> to vector<16x1xf32>
    %70 = tpu.reciprocal %69 {approx = true} : vector<16x1xf32> -> vector<16x1xf32>
    %71 = vector.broadcast %70 : vector<16x1xf32> to vector<16x16xf32>
    %72 = arith.mulf %67, %71 : vector<16x16xf32>
    %cst_21 = arith.constant dense<0.000000e+00> : vector<16x8xf32>
    %73 = tpu.matmul %72, %60, %cst_21 {dimension_numbers = #tpu.dot_dimension_numbers<[1], [0], [0], [1], [0, 0, 1, 1], [], []>} : vector<16x16xf32>, vector<16x8xf32>, vector<16x8xf32> -> vector<16x8xf32>
    %74 = vector.extract_strided_slice %23 {offsets = [0, 24], sizes = [16, 8], strides = [1, 1]} : vector<16x128xf32> to vector<16x8xf32>
    %75 = vector.extract_strided_slice %23 {offsets = [0, 56], sizes = [16, 8], strides = [1, 1]} : vector<16x128xf32> to vector<16x8xf32>
    %76 = vector.extract_strided_slice %23 {offsets = [0, 88], sizes = [16, 8], strides = [1, 1]} : vector<16x128xf32> to vector<16x8xf32>
    %cst_22 = arith.constant dense<0.000000e+00> : vector<16x16xf32>
    %77 = tpu.matmul %74, %75, %cst_22 {dimension_numbers = #tpu.dot_dimension_numbers<[1], [1], [0], [0], [0, 0, 1, 0], [], []>} : vector<16x8xf32>, vector<16x8xf32>, vector<16x16xf32> -> vector<16x16xf32>
    %78 = arith.addf %77, %25 : vector<16x16xf32>
    %cst_23 = arith.constant dense<0xFF800000> : vector<16xf32>
    %79 = vector.multi_reduction <maximumf>, %78, %cst_23 [1] : vector<16x16xf32> to vector<16xf32>
    %80 = vector.shape_cast %79 : vector<16xf32> to vector<16x1xf32>
    %81 = vector.broadcast %80 : vector<16x1xf32> to vector<16x16xf32>
    %82 = arith.subf %78, %81 : vector<16x16xf32>
    %83 = math.exp %82 : vector<16x16xf32>
    %cst_24 = arith.constant dense<0.000000e+00> : vector<16xf32>
    %84 = vector.multi_reduction <add>, %83, %cst_24 [1] : vector<16x16xf32> to vector<16xf32>
    %85 = vector.shape_cast %84 : vector<16xf32> to vector<16x1xf32>
    %86 = tpu.reciprocal %85 {approx = true} : vector<16x1xf32> -> vector<16x1xf32>
    %87 = vector.broadcast %86 : vector<16x1xf32> to vector<16x16xf32>
    %88 = arith.mulf %83, %87 : vector<16x16xf32>
    %cst_25 = arith.constant dense<0.000000e+00> : vector<16x8xf32>
    %89 = tpu.matmul %88, %76, %cst_25 {dimension_numbers = #tpu.dot_dimension_numbers<[1], [0], [0], [1], [0, 0, 1, 1], [], []>} : vector<16x16xf32>, vector<16x8xf32>, vector<16x8xf32> -> vector<16x8xf32>
    %90 = tpu.concatenate %41, %57, %73, %89 in 1 : vector<16x8xf32>, vector<16x8xf32>, vector<16x8xf32>, vector<16x8xf32> -> vector<16x32xf32>
    %c32 = arith.constant 32 : index
    %c0_26 = arith.constant 0 : index
    %91 = vector.load %arg1[%c32, %c0_26] : memref<184x128xf32, #tpu.memory_space<vmem>>, vector<32x128xf32>
    %cst_27 = arith.constant dense<0.000000e+00> : vector<16x128xf32>
    %92 = tpu.matmul %90, %91, %cst_27 {dimension_numbers = #tpu.dot_dimension_numbers<[1], [0], [0], [1], [0, 0, 1, 1], [], []>} : vector<16x32xf32>, vector<32x128xf32>, vector<16x128xf32> -> vector<16x128xf32>
    %c161 = arith.constant 161 : index
    %c0_28 = arith.constant 0 : index
    %93 = vector.load %arg1[%c161, %c0_28] : memref<184x128xf32, #tpu.memory_space<vmem>>, vector<1x128xf32>
    %94 = vector.broadcast %93 : vector<1x128xf32> to vector<16x128xf32>
    %95 = arith.addf %92, %94 : vector<16x128xf32>
    %96 = vector.extract_strided_slice %95 {offsets = [0, 0], sizes = [16, 32], strides = [1, 1]} : vector<16x128xf32> to vector<16x32xf32>
    %97 = arith.addf %0, %96 : vector<16x32xf32>
    %cst_29 = arith.constant dense<0.000000e+00> : vector<16xf32>
    %98 = vector.multi_reduction <add>, %97, %cst_29 [1] : vector<16x32xf32> to vector<16xf32>
    %99 = vector.shape_cast %98 : vector<16xf32> to vector<16x1xf32>
    %cst_30 = arith.constant 3.200000e+01 : f32
    %100 = vector.broadcast %cst_30 : f32 to vector<16x1xf32>
    %101 = arith.divf %99, %100 : vector<16x1xf32>
    %102 = vector.broadcast %101 : vector<16x1xf32> to vector<16x32xf32>
    %103 = arith.subf %97, %102 : vector<16x32xf32>
    %104 = arith.mulf %103, %103 : vector<16x32xf32>
    %cst_31 = arith.constant dense<0.000000e+00> : vector<16xf32>
    %105 = vector.multi_reduction <add>, %104, %cst_31 [1] : vector<16x32xf32> to vector<16xf32>
    %106 = vector.shape_cast %105 : vector<16xf32> to vector<16x1xf32>
    %cst_32 = arith.constant 3.200000e+01 : f32
    %107 = vector.broadcast %cst_32 : f32 to vector<16x1xf32>
    %108 = arith.divf %106, %107 : vector<16x1xf32>
    %109 = vector.broadcast %101 : vector<16x1xf32> to vector<16x32xf32>
    %110 = arith.subf %97, %109 : vector<16x32xf32>
    %cst_33 = arith.constant 9.99999997E-7 : f32
    %111 = vector.broadcast %cst_33 : f32 to vector<16x1xf32>
    %112 = arith.addf %108, %111 : vector<16x1xf32>
    %113 = math.rsqrt %112 : vector<16x1xf32>
    %114 = vector.broadcast %113 : vector<16x1xf32> to vector<16x32xf32>
    %115 = arith.mulf %110, %114 : vector<16x32xf32>
    %c64 = arith.constant 64 : index
    %c0_34 = arith.constant 0 : index
    %116 = vector.load %arg1[%c64, %c0_34] : memref<184x128xf32, #tpu.memory_space<vmem>>, vector<32x128xf32>
    %cst_35 = arith.constant dense<0.000000e+00> : vector<16x128xf32>
    %117 = tpu.matmul %115, %116, %cst_35 {dimension_numbers = #tpu.dot_dimension_numbers<[1], [0], [0], [1], [0, 0, 1, 1], [], []>} : vector<16x32xf32>, vector<32x128xf32>, vector<16x128xf32> -> vector<16x128xf32>
    %c162 = arith.constant 162 : index
    %c0_36 = arith.constant 0 : index
    %118 = vector.load %arg1[%c162, %c0_36] : memref<184x128xf32, #tpu.memory_space<vmem>>, vector<1x128xf32>
    %119 = vector.broadcast %118 : vector<1x128xf32> to vector<16x128xf32>
    %120 = arith.addf %117, %119 : vector<16x128xf32>
    %121 = vector.extract_strided_slice %120 {offsets = [0, 0], sizes = [16, 64], strides = [1, 1]} : vector<16x128xf32> to vector<16x64xf32>
    %cst_37 = arith.constant 5.000000e-01 : f32
    %122 = vector.broadcast %cst_37 : f32 to vector<16x64xf32>
    %123 = arith.mulf %122, %121 : vector<16x64xf32>
    %cst_38 = arith.constant 0.707106769 : f32
    %124 = vector.broadcast %cst_38 : f32 to vector<16x64xf32>
    %125 = arith.mulf %121, %124 : vector<16x64xf32>
    %126 = math.erf %125 : vector<16x64xf32>
    %cst_39 = arith.constant 1.000000e+00 : f32
    %127 = vector.broadcast %cst_39 : f32 to vector<16x64xf32>
    %128 = arith.addf %127, %126 : vector<16x64xf32>
    %129 = arith.mulf %123, %128 : vector<16x64xf32>
    %c96 = arith.constant 96 : index
    %c0_40 = arith.constant 0 : index
    %130 = vector.load %arg1[%c96, %c0_40] : memref<184x128xf32, #tpu.memory_space<vmem>>, vector<64x128xf32>
    %cst_41 = arith.constant dense<0.000000e+00> : vector<16x128xf32>
    %131 = tpu.matmul %129, %130, %cst_41 {dimension_numbers = #tpu.dot_dimension_numbers<[1], [0], [0], [1], [0, 0, 1, 1], [], []>} : vector<16x64xf32>, vector<64x128xf32>, vector<16x128xf32> -> vector<16x128xf32>
    %c163 = arith.constant 163 : index
    %c0_42 = arith.constant 0 : index
    %132 = vector.load %arg1[%c163, %c0_42] : memref<184x128xf32, #tpu.memory_space<vmem>>, vector<1x128xf32>
    %133 = vector.broadcast %132 : vector<1x128xf32> to vector<16x128xf32>
    %134 = arith.addf %131, %133 : vector<16x128xf32>
    %135 = vector.extract_strided_slice %134 {offsets = [0, 0], sizes = [16, 32], strides = [1, 1]} : vector<16x128xf32> to vector<16x32xf32>
    %136 = arith.addf %135, %97 : vector<16x32xf32>
    %c0_43 = arith.constant 0 : index
    %c0_44 = arith.constant 0 : index
    %137 = vector.load %arg2[%c0_43, %c0_44] : memref<16x32xf32, #tpu.memory_space<vmem>>, vector<16x32xf32>
    tpu.vector_store %arg2[%c0_43, %c0_44], %136 {strides = array<i32>} : memref<16x32xf32, #tpu.memory_space<vmem>>, vector<16x32xf32>,
    return
  }
}

</mosaic_0001>

<bundles_post_ra>
// kernel: tpu_custom_call.1
= control target key start
LH: loop header
LB: loop body
LE: loop exit
PB: predicated region body
PF: predicated region fallthrough
CT: control target
= control target key end

     0   :  { %7 = vsyncpa [#allocation3], 0  ;;  %s2008_s0 = inlined_call_operand.hbm [shape: f32[16,32], index: 0, kind: input, shape index: {}]   ;;  %s2009_s1 = inlined_call_operand.hbm [shape: f32[184,128], index: 1, kind: input, shape index: {}]   ;;  %s2010_s2 = inlined_call_operand.hbm [shape: f32[16,32], index: 2, kind: output, shape index: {}]  }
   0x1   :  { %8 = vsyncpa [#allocation6], 0 }
   0x2   :  { %9 = vsyncpa [#allocation4], 0  ;;  %s1786_s9 = smov [#allocation2]   ;;  %s1714_s13 = scalar_lea.hbm %s2008_s0, 256 }
   0x3   :  { %s15_s10 = sshll.u32 %s1786_s9, 4  ;;  %p1715_p0 = scmp.ne.s32.totalorder %s2008_s0, %s1714_s13  ;;  %s16_s10 = int_to_ptr.vmem [resolvable:$true] %s15_s10 }
   0x4   :  { %p1718_p1 = scmp.lt.u32.totalorder %s1714_s13, %s2008_s0 }
   0x6   :  { %p1720_p2 = pnand %p1718_p1, %p1715_p0 }
   0x8   :  { %1723 = shalt.err (!%p1720_p2)
}
   0x9   :  { %s1724_s18 = scalar_lea.vmem %s16_s10, 256  ;;  %p1729_p4 = scmp.lt.s32.totalorder %s16_s10, %s16_s10 }
   0xa   :  { %p1725_p3 = scmp.ne.s32.totalorder %s16_s10, %s1724_s18  ;;  %p1730_p5 = scmp.lt.s32.totalorder %s1724_s18, %s1724_s18 }
   0xc   :  { %p1731_p6 = por %p1730_p5, %p1729_p4 }
   0xe   :  { %p1732_p7 = pnand %p1731_p6, %p1725_p3 }
  0x10   :  { %1735 = shalt.err (!%p1732_p7)
}
  0x11   :  { %s1787_s19 = smov 128   ;;  %s1788_s20 = smov 8  }
  0x12   :  { %21 = dma.hbm_to_vmem [thread:$0]  %s2008_s0, 256, %s16_s10, [#allocation3], %s1787_s19, %s1787_s19, %s1788_s20  }
  0x13   :  { %s1789_s23 = smov [#allocation5]   ;;  %s1736_s27 = scalar_lea.hbm %s2009_s1, 2944 }
  0x14   :  { %s27_s24 = sshll.u32 %s1789_s23, 4  ;;  %p1737_p8 = scmp.ne.s32.totalorder %s2009_s1, %s1736_s27  ;;  %s28_s24 = int_to_ptr.vmem [resolvable:$true] %s27_s24 }
  0x15   :  { %p1740_p9 = scmp.lt.u32.totalorder %s1736_s27, %s2009_s1 }
  0x17   :  { %p1742_p10 = pnand %p1740_p9, %p1737_p8 }
  0x19   :  { %1745 = shalt.err (!%p1742_p10)
}
  0x1a   :  { %s1746_s4 = scalar_lea.vmem %s28_s24, 2944  ;;  %p1751_p12 = scmp.lt.s32.totalorder %s28_s24, %s28_s24 }
  0x1b   :  { %p1747_p11 = scmp.ne.s32.totalorder %s28_s24, %s1746_s4  ;;  %p1752_p13 = scmp.lt.s32.totalorder %s1746_s4, %s1746_s4 }
  0x1d   :  { %p1753_p0 = por %p1752_p13, %p1751_p12 }
  0x1f   :  { %p1754_p1 = pnand %p1753_p0, %p1747_p11 }
  0x21   :  { %1757 = shalt.err (!%p1754_p1)
}
  0x22   :  { %33 = dma.hbm_to_vmem [thread:$0]  %s2009_s1, 2944, %s28_s24, [#allocation6], %s1787_s19, %s1787_s19, %s1788_s20  }
  0x23   :  { %1780 = dma.done.wait [#allocation3], 256  }
  0x24   :  { %1781 = vsyncadd [#allocation3], 4294967040 }
  0x25   :  { %1782 = dma.done.wait [#allocation6], 2944  }
  0x26   :  { %1783 = vsyncadd [#allocation6], 4294964352  ;;  %vm42_vm0 = vcmask 261120   ;;  %v1849_v0 = vld [vmem:[#allocation2] sm:$0xff]  ;;  %v1851_v1 = vld [vmem:[#allocation2 + $0x8] sm:$0xff]  ;;  %vm168_vm1 = vcmask 64512  }
  0x27   :  { %v43_v2 = vsel %vm42_vm0, %v1849_v0, 0.0  ;;  %v46_v3 = vsel %vm42_vm0, %v1851_v1, 0.0  ;;  %v70_v14 = vld [vmem:[#allocation5] sm:$0xff]  ;;  %v71_v15 = vld [vmem:[#allocation5 + $0x8] sm:$0xff]  ;;  %v72_v16 = vld [vmem:[#allocation5 + $0x10] sm:$0xff]  ;;  %s1790_s1 = smov 88  }
  0x28   :  { %44 = vadd.xlane.f32.xlu0 %v43_v2  ;;  %v1532_v17 = vpack.c.bf16 %v71_v15, %v70_v14  ;;  %v73_v18 = vld [vmem:[#allocation5 + $0x18] sm:$0xff]  ;;  %v1328_v30 = vld [vmem:[#allocation5 + $0xa0] ss:$0 sm:$0xff]  ;;  %s1791_s6 = smov 96   ;;  %s1792_s7 = smov 120   ;;  %vm1879_vm2 = vmpackc.low %vm168_vm1, %vm168_vm1  ;;  %vm252_vm3 = vcmask 130048  }
  0x29   :  { %v1536_v19 = vpack.c.bf16 %v73_v18, %v72_v16  ;;  %v1895_v47 = vld [vmem:[#allocation5 + $0xb0] sm:$0xff]  ;;  %v1897_v48 = vld [vmem:[#allocation5 + $0xa8] sm:$0xff]  ;;  %s1793_s8 = smov 56   ;;  %s1794_s9 = smov 64   ;;  %vm990_vm4 = vcmask 195584   ;;  %vm1224_vm5 = vcmask 523264  }
  0x2a   :  { %1533 = vmatprep.subr.bf16.mxu1 %v1532_v17  ;;  %s1795_s10 = smov 80   ;;  %s1796_s11 = smov 112  }
  0x2b   :  { %1535 = vmatpush3.bf16.msra.mxu1 %v1532_v17  ;;  %s1797_s12 = smov 48   ;;  %s1798_s13 = smov 104  }
  0x2c   :  { %47 = vadd.xlane.f32.xlu0 %v46_v3  ;;  %1537 = vmatprep.subr.bf16.mxu1 %v1536_v19  ;;  %s1799_s14 = smov 72   ;;  %s1800_s15 = smov 40  }
  0x2d   :  { %s1801_s16 = smov 16   ;;  %s1802_s17 = smov 24  }
  0x2e   :  { %s1803_s18 = smov [#allocation7]  }
  0x2f   :  { %1539 = vmatpush3.bf16.msra.mxu1 %v1536_v19  ;;  %s1315_s21 = sshll.u32 %s1803_s18, 4  ;;  %s1316_s21 = int_to_ptr.vmem [resolvable:$true] %s1315_s21 }
  0x30   :  { %s1758_s22 = scalar_lea.vmem %s1316_s21, 256  ;;  %p1763_p3 = scmp.lt.s32.totalorder %s1316_s21, %s1316_s21 }
  0x31   :  { %p1759_p2 = scmp.ne.s32.totalorder %s1316_s21, %s1758_s22  ;;  %p1764_p4 = scmp.lt.s32.totalorder %s1758_s22, %s1758_s22 }
  0x33   :  { %p1765_p5 = por %p1764_p4, %p1763_p3 }
  0x35   :  { %p1766_p6 = pnand %p1765_p5, %p1759_p2 }
  0xb5   :  { %v45_v4 = vpop.xlane.xlu0 %44 }
  0xb6   :  { %v50_v5 = vmul.f32 0.03125, %v45_v4 }
  0xb8   :  { %v52_v6 = vsub.f32 %v1849_v0, %v50_v5 }
  0xb9   :  { %v48_v7 = vpop.xlane.xlu0 %47 }
  0xba   :  { %v51_v8 = vmul.f32 0.03125, %v48_v7  ;;  %v54_v9 = vmul.f32 %v52_v6, %v52_v6 }
  0xbc   :  { %v53_v10 = vsub.f32 %v1851_v1, %v51_v8  ;;  %v56_v11 = vsel %vm42_vm0, %v54_v9, 0.0 }
  0xbd   :  { %57 = vadd.xlane.f32.xlu1 %v56_v11 }
  0xbe   :  { %v55_v12 = vmul.f32 %v53_v10, %v53_v10 }
  0xc0   :  { %v59_v13 = vsel %vm42_vm0, %v55_v12, 0.0 }
  0xc1   :  { %60 = vadd.xlane.f32.xlu1 %v59_v13 }
 0x14a   :  { %v58_v20 = vpop.xlane.xlu1 %57 }
 0x14b   :  { %v62_v21 = vmul.f32 0.03125, %v58_v20 }
 0x14d   :  { %v64_v22 = vadd.f32 1e-06, %v62_v21 }
 0x14e   :  { %v61_v23 = vpop.xlane.xlu1 %60 }
 0x14f   :  { %1670 = vrsqrt.f32 %v64_v22  ;;  %v63_v24 = vmul.f32 0.03125, %v61_v23 }
 0x151   :  { %v65_v25 = vadd.f32 1e-06, %v63_v24 }
 0x153   :  { %1672 = vrsqrt.f32 %v65_v25 }
 0x159   :  { %v1671_v26 = vpop.eup %1670 }
 0x15a   :  { %v68_v27 = vmul.f32 %v1671_v26, %v52_v6 }
 0x15c   :  { %1432 = vmatprep.mubr.msk.f32.mxu1 %vm42_vm0, %v68_v27 }
 0x15d   :  { %v1673_v28 = vpop.eup %1672 }
 0x15e   :  { %v69_v29 = vmul.f32 %v1673_v28, %v53_v10 }
 0x160   :  { %1433 = vmatmul.mubr.msk.f32.vlgmr.msra.gmra.mrb[0].mxu1 %vm42_vm0, %v69_v29 }
 0x233   :  { %v1434_v31 = vpop.f32.mrb[0].mxu1 }
 0x234   :  { %v1863_v32 = vadd.f32 %v1434_v31, %v1328_v30  ;;  %v151_v33 = vpop.f32.mrb[1].mxu1 }
 0x235   :  { %v1865_v34 = vadd.f32 %v1328_v30, %v151_v33 }
 0x237   :  { %1439 = vmatprep.mubr.msk.f32.mxu1 %vm168_vm1, %v1865_v34  ;;  %v1871_v35 = vpack.i.bf16 %v1863_v32, %v1865_v34 }
 0x239   :  { %1636 = vrot.lane.b32.xlu1 %v1871_v35, %s1790_s1  ;;  %1631 = vrot.lane.b32.xlu0 %v1871_v35, %s1791_s6 }
 0x23d   :  { %362 = vrot.lane.b32.xlu1 %v1865_v34, %s1792_s7 }
 0x241   :  { %364 = vrot.lane.b32.xlu1 %v1863_v32, %s1792_s7 }
 0x2ab   :  { %v1637_v36 = vpop.permute.xlu1 %1636  ;;  %v1632_v37 = vpop.permute.xlu0 %1631 }
 0x2ac   :  { %v1639_v38 = vunpack.i.h.bf16 %v1637_v36  ;;  %v1638_v39 = vunpack.i.l.bf16 %v1637_v36  ;;  %v1634_v40 = vunpack.i.h.bf16 %v1632_v37  ;;  %v1633_v41 = vunpack.i.l.bf16 %v1632_v37 }
 0x2ae   :  { %v1540_v43 = vpack.c.bf16 %v1634_v40, %v1633_v41  ;;  %v1550_v44 = vpack.c.bf16 %v1639_v38, %v1638_v39 }
 0x2af   :  { %v363_v45 = vpop.permute.xlu1 %362 }
 0x2b0   :  { %1542 = vmatprep.subr.msk.bf16.mxu1 %vm1879_vm2, %v1540_v43 }
 0x2b1   :  { %1545 = vmatpush3.bf16.xpose.msk.msra.mxu1 %vm1879_vm2, %v1540_v43 }
 0x2b2   :  { %1552 = vmatprep.subr.msk.bf16.mxu1 %vm1879_vm2, %v1550_v44 }
 0x2b3   :  { %v365_v46 = vpop.permute.xlu1 %364 }
 0x2b8   :  { %1440 = vmatmul.mubr.msk.f32.vlgmr.msra.gmra.mrb[2].mxu1 %vm168_vm1, %v1863_v32 }
 0x2b9   :  { %1555 = vmatpush3.bf16.xpose.msk.msra.mxu1 %vm1879_vm2, %v1550_v44  ;;  %1453 = vmatprep.mubr.msk.f32.mxu1 %vm168_vm1, %v363_v45 }
 0x2c0   :  { %1454 = vmatmul.mubr.msk.f32.vlgmr.msra.gmra.mrb[4].mxu1 %vm168_vm1, %v365_v46 }
 0x38b   :  { %v1441_v49 = vpop.f32.mrb[2].mxu1 }
 0x38c   :  { %v249_v50 = vadd.f32 %v1441_v49, %v1895_v47  ;;  %v243_v51 = vpop.f32.mrb[3].mxu1 }
 0x38d   :  { %v244_v52 = vadd.f32 %v243_v51, %v1897_v48 }
 0x38e   :  { %v256_v53 = vsel %vm252_vm3, %v249_v50, -inf }
 0x38f   :  { %257 = vmax.xlane.f32.xlu1 %v256_v53  ;;  %v253_v54 = vsel %vm252_vm3, %v244_v52, -inf }
 0x390   :  { %254 = vmax.xlane.f32.xlu0 %v253_v54 }
 0x393   :  { %v1455_v55 = vpop.f32.mrb[4].mxu1 }
 0x394   :  { %v444_v56 = vpop.f32.mrb[5].mxu1  ;;  %v450_v58 = vadd.f32 %v1455_v55, %v1895_v47 }
 0x395   :  { %v445_v57 = vadd.f32 %v444_v56, %v1897_v48 }
 0x396   :  { %v456_v60 = vsel %vm252_vm3, %v450_v58, -inf }
 0x397   :  { %v453_v59 = vsel %vm252_vm3, %v445_v57, -inf }
 0x398   :  { %454 = vmax.xlane.f32.xlu0 %v453_v59 }
 0x39c   :  { %457 = vmax.xlane.f32.xlu0 %v456_v60 }
 0x41c   :  { %v258_v61 = vpop.xlane.xlu1 %257 }
 0x41d   :  { %v260_v62 = vsub.f32 %v249_v50, %v258_v61  ;;  %v255_v63 = vpop.xlane.xlu0 %254 }
 0x41e   :  { %v259_v2 = vsub.f32 %v244_v52, %v255_v63 }
 0x41f   :  { %v263_v3 = vmul.f32 1.442695, %v260_v62 }
 0x420   :  { %v261_v4 = vmul.f32 1.442695, %v259_v2 }
 0x421   :  { %1674 = vpow2.f32 %v263_v3 }
 0x422   :  { %1676 = vpow2.f32 %v261_v4 }
 0x425   :  { %v455_v5 = vpop.xlane.xlu0 %454 }
 0x426   :  { %v459_v6 = vsub.f32 %v445_v57, %v455_v5 }
 0x428   :  { %v461_v7 = vmul.f32 1.442695, %v459_v6 }
 0x429   :  { %v458_v8 = vpop.xlane.xlu0 %457 }
 0x42a   :  { %1678 = vpow2.f32 %v461_v7  ;;  %v460_v9 = vsub.f32 %v450_v58, %v458_v8 }
 0x42b   :  { %v1675_v10 = vpop.eup %1674 }
 0x42c   :  { %v1677_v11 = vpop.eup %1676  ;;  %v463_v12 = vmul.f32 1.442695, %v460_v9  ;;  %v268_v13 = vsel %vm252_vm3, %v1675_v10, 0.0 }
 0x42d   :  { %269 = vadd.xlane.f32.xlu1 %v268_v13  ;;  %v265_v14 = vsel %vm252_vm3, %v1677_v11, 0.0 }
 0x42e   :  { %1680 = vpow2.f32 %v463_v12  ;;  %266 = vadd.xlane.f32.xlu0 %v265_v14 }
 0x434   :  { %v1679_v15 = vpop.eup %1678 }
 0x435   :  { %v465_v16 = vsel %vm252_vm3, %v1679_v15, 0.0 }
 0x436   :  { %466 = vadd.xlane.f32.xlu0 %v465_v16 }
 0x438   :  { %v1681_v17 = vpop.eup %1680 }
 0x439   :  { %v468_v18 = vsel %vm252_vm3, %v1681_v17, 0.0 }
 0x43a   :  { %469 = vadd.xlane.f32.xlu1 %v468_v18 }
 0x44b   :  { %1646 = vrot.lane.b32.xlu1 %v1871_v35, %s1793_s8 }
 0x44c   :  { %1641 = vrot.lane.b32.xlu0 %v1871_v35, %s1794_s9 }
 0x44f   :  { %1651 = vrot.lane.b32.xlu1 %v1871_v35, %s1795_s10 }
 0x450   :  { %564 = vrot.lane.b32.xlu0 %v1863_v32, %s1796_s11 }
 0x453   :  { %562 = vrot.lane.b32.xlu1 %v1865_v34, %s1796_s11 }
 0x4ba   :  { %v270_v20 = vpop.xlane.xlu1 %269 }
 0x4bb   :  { %v267_v19 = vpop.xlane.xlu0 %266 }
 0x4bc   :  { %1682 = vrcp.f32 %v267_v19 }
 0x4bd   :  { %1684 = vrcp.f32 %v270_v20 }
 0x4c3   :  { %v467_v21 = vpop.xlane.xlu0 %466 }
 0x4c4   :  { %1686 = vrcp.f32 %v467_v21 }
 0x4c6   :  { %v1683_v22 = vpop.eup %1682 }
 0x4c7   :  { %v470_v23 = vpop.xlane.xlu1 %469  ;;  %v1642_v24 = vpop.permute.xlu0 %1641  ;;  %v273_v25 = vmul.f32 %v1683_v22, %v1677_v11 }
 0x4c8   :  { %1688 = vrcp.f32 %v470_v23  ;;  %v1644_v26 = vunpack.i.h.bf16 %v1642_v24  ;;  %v1643_v27 = vunpack.i.l.bf16 %v1642_v24  ;;  %v1685_v29 = vpop.eup %1684 }
 0x4c9   :  { %1446 = vmatprep.mubr.msk.f32.mxu0 %vm252_vm3, %v273_v25  ;;  %v274_v38 = vmul.f32 %v1685_v29, %v1675_v10 }
 0x4ca   :  { %v1546_v28 = vpack.c.bf16 %v1644_v26, %v1643_v27 }
 0x4cb   :  { %v1647_v30 = vpop.permute.xlu1 %1646  ;;  %v565_v50 = vpop.permute.xlu0 %564 }
 0x4cc   :  { %v1649_v31 = vunpack.i.h.bf16 %v1647_v30  ;;  %v1648_v33 = vunpack.i.l.bf16 %v1647_v30  ;;  %1547 = vmatprep.subr.bf16.mxu0 %v1546_v28 }
 0x4cd   :  { %1549 = vmatpush3.bf16.msra.mxu0 %v1546_v28 }
 0x4ce   :  { %v1687_v36 = vpop.eup %1686  ;;  %v1556_v37 = vpack.c.bf16 %v1649_v31, %v1648_v33 }
 0x4cf   :  { %v1652_v39 = vpop.permute.xlu1 %1651  ;;  %v473_v40 = vmul.f32 %v1687_v36, %v1679_v15 }
 0x4d0   :  { %v1654_v41 = vunpack.i.h.bf16 %v1652_v39  ;;  %v1653_v43 = vunpack.i.l.bf16 %v1652_v39  ;;  %1447 = vmatmul.mubr.msk.f32.vlgmr.msra.gmra.mrb[0].mxu0 %vm252_vm3, %v274_v38  ;;  %1557 = vmatprep.subr.bf16.mxu0 %v1556_v37 }
 0x4d1   :  { %1559 = vmatpush3.bf16.msra.mxu0 %v1556_v37  ;;  %1460 = vmatprep.mubr.msk.f32.mxu0 %vm252_vm3, %v473_v40 }
 0x4d2   :  { %v1689_v44 = vpop.eup %1688  ;;  %v1560_v45 = vpack.c.bf16 %v1654_v41, %v1653_v43 }
 0x4d3   :  { %v474_v46 = vmul.f32 %v1689_v44, %v1681_v17  ;;  %v563_v49 = vpop.permute.xlu1 %562 }
 0x4d4   :  { %1562 = vmatprep.subr.msk.bf16.mxu0 %vm1879_vm2, %v1560_v45 }
 0x4d5   :  { %1461 = vmatmul.mubr.msk.f32.vlgmr.msra.gmra.mrb[2].mxu0 %vm252_vm3, %v474_v46 }
 0x4d6   :  { %1467 = vmatprep.mubr.msk.f32.mxu0 %vm168_vm1, %v563_v49 }
 0x4da   :  { %1565 = vmatpush3.bf16.xpose.msk.msra.mxu0 %vm1879_vm2, %v1560_v45 }
 0x4e1   :  { %1468 = vmatmul.mubr.msk.f32.vlgmr.msra.gmra.mrb[4].mxu0 %vm168_vm1, %v565_v50 }
 0x5a3   :  { %v1926_v51 = vpop.f32.mrb[0].mxu0 }
 0x5a4   :  { %v1928_v52 = vpop.f32.mrb[1].mxu0 }
 0x5a8   :  { %v1930_v53 = vpop.f32.mrb[2].mxu0 }
 0x5a9   :  { %v1932_v54 = vpop.f32.mrb[3].mxu0 }
 0x5b4   :  { %v1469_v55 = vpop.f32.mrb[4].mxu0 }
 0x5b5   :  { %v650_v56 = vadd.f32 %v1469_v55, %v1895_v47  ;;  %v644_v57 = vpop.f32.mrb[5].mxu0 }
 0x5b6   :  { %v645_v58 = vadd.f32 %v644_v57, %v1897_v48  ;;  %v994_v57 = vld [vmem:[#allocation5 + $0x28] sm:$0xff] }
 0x5b7   :  { %v656_v59 = vsel %vm252_vm3, %v650_v56, -inf }
 0x5b8   :  { %657 = vmax.xlane.f32.xlu0 %v656_v59  ;;  %v653_v60 = vsel %vm252_vm3, %v645_v58, -inf }
 0x5b9   :  { %654 = vmax.xlane.f32.xlu1 %v653_v60  ;;  %v996_v60 = vld [vmem:[#allocation5 + $0x38] sm:$0xff] }
 0x5ca   :  { %1656 = vrot.lane.b32.xlu1 %v1871_v35, %s1797_s12 }
 0x5ce   :  { %762 = vrot.lane.b32.xlu1 %v1865_v34, %s1798_s13 }
 0x5d2   :  { %764 = vrot.lane.b32.xlu1 %v1863_v32, %s1798_s13 }
 0x645   :  { %v658_v61 = vpop.xlane.xlu0 %657 }
 0x646   :  { %v660_v62 = vsub.f32 %v650_v56, %v658_v61  ;;  %v655_v63 = vpop.xlane.xlu1 %654  ;;  %v993_v56 = vld [vmem:[#allocation5 + $0x20] sm:$0xff] }
 0x647   :  { %v659_v2 = vsub.f32 %v645_v58, %v655_v63  ;;  %v995_v58 = vld [vmem:[#allocation5 + $0x30] sm:$0xff]  ;;  %v1580_v59 = vpack.c.bf16 %v994_v57, %v993_v56  ;;  %v1218_v57 = vld [vmem:[#allocation5 + $0x98] sm:$0xff] }
 0x648   :  { %v663_v3 = vmul.f32 1.442695, %v660_v62  ;;  %v1584_v61 = vpack.c.bf16 %v996_v60, %v995_v58  ;;  %v1217_v56 = vld [vmem:[#allocation5 + $0x90] sm:$0xff] }
 0x649   :  { %v661_v4 = vmul.f32 1.442695, %v659_v2  ;;  %v1608_v58 = vpack.c.bf16 %v1218_v57, %v1217_v56 }
 0x64a   :  { %1690 = vpow2.f32 %v663_v3  ;;  %v1657_v5 = vpop.permute.xlu1 %1656 }
 0x64b   :  { %v1659_v6 = vunpack.i.h.bf16 %v1657_v5  ;;  %v1658_v7 = vunpack.i.l.bf16 %v1657_v5  ;;  %1692 = vpow2.f32 %v661_v4 }
 0x64d   :  { %v1566_v8 = vpack.c.bf16 %v1659_v6, %v1658_v7 }
 0x64e   :  { %v763_v21 = vpop.permute.xlu1 %762 }
 0x64f   :  { %1567 = vmatprep.subr.bf16.mxu1 %v1566_v8 }
 0x650   :  { %1569 = vmatpush3.bf16.msra.mxu1 %v1566_v8 }
 0x652   :  { %v765_v22 = vpop.permute.xlu1 %764 }
 0x654   :  { %v1691_v9 = vpop.eup %1690 }
 0x655   :  { %v668_v10 = vsel %vm252_vm3, %v1691_v9, 0.0  ;;  %v1693_v34 = vpop.eup %1692 }
 0x656   :  { %669 = vadd.xlane.f32.xlu0 %v668_v10  ;;  %v665_v32 = vsel %vm252_vm3, %v1693_v34, 0.0 }
 0x65a   :  { %666 = vadd.xlane.f32.xlu0 %v665_v32 }
 0x670   :  { %1661 = vrot.lane.b32.xlu0 %v1871_v35, %s1799_s14 }
 0x6e3   :  { %v670_v11 = vpop.xlane.xlu0 %669 }
 0x6e4   :  { %1694 = vrcp.f32 %v670_v11  ;;  %v1355_v11 = vld [vmem:[#allocation5 + $0xa1] ss:$0 sm:$0xff] }
 0x6e7   :  { %v667_v12 = vpop.xlane.xlu0 %666 }
 0x6e8   :  { %1696 = vrcp.f32 %v667_v12 }
 0x6eb   :  { %v1662_v13 = vpop.permute.xlu0 %1661 }
 0x6ec   :  { %v1664_v14 = vunpack.i.h.bf16 %v1662_v13  ;;  %v1663_v15 = vunpack.i.l.bf16 %v1662_v13 }
 0x6ee   :  { %v1570_v16 = vpack.c.bf16 %v1664_v14, %v1663_v15  ;;  %v1695_v17 = vpop.eup %1694 }
 0x6ef   :  { %v674_v20 = vmul.f32 %v1695_v17, %v1691_v9 }
 0x6f0   :  { %1572 = vmatprep.subr.msk.bf16.mxu1 %vm1879_vm2, %v1570_v16 }
 0x6f2   :  { %v1697_v18 = vpop.eup %1696 }
 0x6f3   :  { %v673_v19 = vmul.f32 %v1697_v18, %v1693_v34 }
 0x6f5   :  { %1474 = vmatprep.mubr.msk.f32.mxu1 %vm252_vm3, %v673_v19 }
 0x6f6   :  { %1475 = vmatmul.mubr.msk.f32.vlgmr.msra.gmra.mrb[6].mxu1 %vm252_vm3, %v674_v20 }
 0x6f7   :  { %1575 = vmatpush3.bf16.xpose.msk.msra.mxu1 %vm1879_vm2, %v1570_v16  ;;  %1481 = vmatprep.mubr.msk.f32.mxu1 %vm168_vm1, %v763_v21 }
 0x6fe   :  { %1482 = vmatmul.mubr.msk.f32.vlgmr.msra.gmra.mrb[8].mxu1 %vm168_vm1, %v765_v22 }
 0x7c9   :  { %v1476_v23 = vpop.f32.mrb[6].mxu1 }
 0x7ca   :  { %v753_v24 = vpop.f32.mrb[7].mxu1 }
 0x7d1   :  { %v1483_v25 = vpop.f32.mrb[8].mxu1 }
 0x7d2   :  { %v850_v26 = vadd.f32 %v1483_v25, %v1895_v47  ;;  %v844_v27 = vpop.f32.mrb[9].mxu1 }
 0x7d3   :  { %v845_v28 = vadd.f32 %v844_v27, %v1897_v48  ;;  %v1112_v27 = vld [vmem:[#allocation5 + $0x48] sm:$0xff] }
 0x7d4   :  { %v856_v29 = vsel %vm252_vm3, %v850_v26, -inf }
 0x7d5   :  { %857 = vmax.xlane.f32.xlu0 %v856_v29  ;;  %v853_v30 = vsel %vm252_vm3, %v845_v28, -inf  ;;  %v1113_v29 = vld [vmem:[#allocation5 + $0x50] sm:$0xff] }
 0x7d6   :  { %854 = vmax.xlane.f32.xlu1 %v853_v30  ;;  %v1114_v30 = vld [vmem:[#allocation5 + $0x58] sm:$0xff] }
 0x7e7   :  { %1666 = vrot.lane.b32.xlu1 %v1871_v35, %s1800_s15 }
 0x7eb   :  { %966 = vrot.lane.b32.xlu1 %v1930_v53, %s1788_s20 }
 0x7ef   :  { %972 = vrot.lane.b32.xlu1 %v753_v24, %s1801_s16 }
 0x7f3   :  { %974 = vrot.lane.b32.xlu1 %v1476_v23, %s1801_s16 }
 0x862   :  { %v858_v42 = vpop.xlane.xlu0 %857 }
 0x863   :  { %v860_v47 = vsub.f32 %v850_v26, %v858_v42  ;;  %v855_v31 = vpop.xlane.xlu1 %854  ;;  %v1111_v26 = vld [vmem:[#allocation5 + $0x40] sm:$0xff]  ;;  %v1592_v42 = vpack.c.bf16 %v1114_v30, %v1113_v29 }
 0x864   :  { %v859_v33 = vsub.f32 %v845_v28, %v855_v31  ;;  %v1588_v28 = vpack.c.bf16 %v1112_v27, %v1111_v26 }
 0x865   :  { %v863_v48 = vmul.f32 1.442695, %v860_v47 }
 0x866   :  { %v861_v36 = vmul.f32 1.442695, %v859_v33  ;;  %1589 = vmatprep.subr.bf16.mxu1 %v1588_v28 }
 0x867   :  { %v1667_v37 = vpop.permute.xlu1 %1666  ;;  %1591 = vmatpush3.bf16.msra.mxu1 %v1588_v28 }
 0x868   :  { %1698 = vpow2.f32 %v861_v36  ;;  %v1669_v38 = vunpack.i.h.bf16 %v1667_v37  ;;  %v1668_v39 = vunpack.i.l.bf16 %v1667_v37  ;;  %1593 = vmatprep.subr.bf16.mxu1 %v1592_v42 }
 0x869   :  { %1700 = vpow2.f32 %v863_v48 }
 0x86a   :  { %v1576_v40 = vpack.c.bf16 %v1669_v38, %v1668_v39 }
 0x86b   :  { %v967_v63 = vpop.permute.xlu1 %966  ;;  %1595 = vmatpush3.bf16.msra.mxu1 %v1592_v42 }
 0x86c   :  { %1577 = vmatprep.subr.bf16.mxu0 %v1576_v40  ;;  %v987_v7 = vsel %vm168_vm1, %v1926_v51, %v967_v63 }
 0x86d   :  { %1579 = vmatpush3.bf16.msra.mxu0 %v1576_v40 }
 0x86e   :  { %1581 = vmatprep.subr.bf16.mxu0 %v1580_v59 }
 0x86f   :  { %v973_v2 = vpop.permute.xlu1 %972 }
 0x872   :  { %v1699_v35 = vpop.eup %1698 }
 0x873   :  { %v865_v41 = vsel %vm252_vm3, %v1699_v35, 0.0  ;;  %v1701_v43 = vpop.eup %1700  ;;  %v975_v4 = vpop.permute.xlu1 %974 }
 0x874   :  { %866 = vadd.xlane.f32.xlu0 %v865_v41  ;;  %v868_v44 = vsel %vm252_vm3, %v1701_v43, 0.0  ;;  %v989_v10 = vsel %vm252_vm3, %v987_v7, %v975_v4  ;;  %v1211_v41 = vld [vmem:[#allocation5 + $0x60] sm:$0xff] }
 0x878   :  { %869 = vadd.xlane.f32.xlu0 %v868_v44 }
 0x88e   :  { %964 = vrot.lane.b32.xlu0 %v1932_v54, %s1788_s20 }
 0x901   :  { %v867_v45 = vpop.xlane.xlu0 %866 }
 0x902   :  { %1702 = vrcp.f32 %v867_v45  ;;  %v1213_v45 = vld [vmem:[#allocation5 + $0x70] sm:$0xff] }
 0x905   :  { %v870_v46 = vpop.xlane.xlu0 %869 }
 0x906   :  { %1704 = vrcp.f32 %v870_v46  ;;  %v1214_v46 = vld [vmem:[#allocation5 + $0x78] sm:$0xff] }
 0x909   :  { %v965_v3 = vpop.permute.xlu0 %964 }
 0x90a   :  { %v986_v5 = vsel %vm168_vm1, %v1928_v52, %v965_v3 }
 0x90b   :  { %v988_v8 = vsel %vm252_vm3, %v986_v5, %v973_v2 }
 0x90c   :  { %v1703_v49 = vpop.eup %1702 }
 0x90d   :  { %v873_v50 = vmul.f32 %v1703_v49, %v1699_v35  ;;  %v1600_v49 = vpack.c.bf16 %v1214_v46, %v1213_v45 }
 0x90f   :  { %1488 = vmatprep.mubr.msk.f32.mxu0 %vm252_vm3, %v873_v50  ;;  %v1215_v50 = vld [vmem:[#allocation5 + $0x80] sm:$0xff] }
 0x910   :  { %v1705_v53 = vpop.eup %1704 }
 0x911   :  { %v874_v55 = vmul.f32 %v1705_v53, %v1701_v43  ;;  %v1212_v43 = vld [vmem:[#allocation5 + $0x68] sm:$0xff] }
 0x912   :  { %v1596_v44 = vpack.c.bf16 %v1212_v43, %v1211_v41  ;;  %v1216_v53 = vld [vmem:[#allocation5 + $0x88] sm:$0xff] }
 0x913   :  { %1489 = vmatmul.mubr.msk.f32.vlgmr.msra.gmra.mrb[6].mxu0 %vm252_vm3, %v874_v55  ;;  %v1604_v55 = vpack.c.bf16 %v1216_v53, %v1215_v50 }
 0x914   :  { %1583 = vmatpush3.bf16.msra.mxu0 %v1580_v59  ;;  %v1358_v59 = vld [vmem:[#allocation5 + $0xa2] ss:$0 sm:$0xff] }
 0x915   :  { %1585 = vmatprep.subr.bf16.mxu0 %v1584_v61 }
 0x918   :  { %1587 = vmatpush3.bf16.msra.mxu0 %v1584_v61 }
 0x919   :  { %1597 = vmatprep.subr.bf16.mxu0 %v1596_v44 }
 0x9e6   :  { %v1490_v54 = vpop.f32.mrb[6].mxu0 }
 0x9e7   :  { %982 = vrot.lane.b32.xlu1 %v1490_v54, %s1802_s17  ;;  %v953_v62 = vpop.f32.mrb[7].mxu0 }
 0x9e8   :  { %980 = vrot.lane.b32.xlu0 %v953_v62, %s1802_s17 }
 0xa59   :  { %v983_v6 = vpop.permute.xlu1 %982 }
 0xa5a   :  { %v981_v9 = vpop.permute.xlu0 %980  ;;  %v992_v32 = vsel %vm990_vm4, %v989_v10, %v983_v6 }
 0xa5b   :  { %v991_v34 = vsel %vm990_vm4, %v988_v8, %v981_v9 }
 0xa5c   :  { %1499 = vmatprep.mubr.msk.f32.mxu0 %vm42_vm0, %v991_v34  ;;  %v1361_v34 = vld [vmem:[#allocation5 + $0xa3] ss:$0 sm:$0xff] }
 0xa5d   :  { %1500 = vmatmul.mubr.msk.f32.vlgmr.msra.gmra.mrb[8].mxu0 %vm42_vm0, %v992_v32 }
 0xa5e   :  { %1599 = vmatpush3.bf16.msra.mxu0 %v1596_v44 }
 0xa5f   :  { %1601 = vmatprep.subr.bf16.mxu0 %v1600_v49 }
 0xa62   :  { %1603 = vmatpush3.bf16.msra.mxu0 %v1600_v49 }
 0xa63   :  { %1605 = vmatprep.subr.bf16.mxu0 %v1604_v55 }
 0xa66   :  { %1607 = vmatpush3.bf16.msra.mxu0 %v1604_v55 }
 0xa67   :  { %1609 = vmatprep.subr.bf16.mxu0 %v1608_v58 }
 0xa6a   :  { %1611 = vmatpush3.bf16.msra.mxu0 %v1608_v58 }
 0xb30   :  { %v1501_v12 = vpop.f32.mrb[8].mxu0 }
 0xb31   :  { %v1080_v13 = vadd.f32 %v1501_v12, %v1355_v11  ;;  %v1074_v52 = vpop.f32.mrb[9].mxu0 }
 0xb32   :  { %v1075_v14 = vadd.f32 %v1355_v11, %v1074_v52 }
 0xb33   :  { %v1974_v15 = vadd.f32 %v1080_v13, %v1851_v1 }
 0xb34   :  { %v1977_v51 = vadd.f32 %v1075_v14, %v1849_v0 }
 0xb35   :  { %v1088_v16 = vsel %vm42_vm0, %v1974_v15, 0.0 }
 0xb36   :  { %1089 = vadd.xlane.f32.xlu1 %v1088_v16  ;;  %v1085_v17 = vsel %vm42_vm0, %v1977_v51, 0.0 }
 0xb37   :  { %1086 = vadd.xlane.f32.xlu0 %v1085_v17 }
 0xbc3   :  { %v1090_v18 = vpop.xlane.xlu1 %1089 }
 0xbc4   :  { %v1092_v19 = vmul.f32 0.03125, %v1090_v18  ;;  %v1087_v20 = vpop.xlane.xlu0 %1086 }
 0xbc5   :  { %v1091_v21 = vmul.f32 0.03125, %v1087_v20 }
 0xbc6   :  { %v1094_v22 = vsub.f32 %v1974_v15, %v1092_v19 }
 0xbc7   :  { %v1093_v1 = vsub.f32 %v1977_v51, %v1091_v21 }
 0xbc8   :  { %v1096_v24 = vmul.f32 %v1094_v22, %v1094_v22 }
 0xbc9   :  { %v1095_v23 = vmul.f32 %v1093_v1, %v1093_v1 }
 0xbca   :  { %v1100_v25 = vsel %vm42_vm0, %v1096_v24, 0.0 }
 0xbcb   :  { %v1097_v0 = vsel %vm42_vm0, %v1095_v23, 0.0 }
 0xbcc   :  { %1098 = vadd.xlane.f32.xlu0 %v1097_v0 }
 0xbd0   :  { %1101 = vadd.xlane.f32.xlu0 %v1100_v25 }
 0xc59   :  { %v1099_v47 = vpop.xlane.xlu0 %1098 }
 0xc5a   :  { %v1103_v31 = vmul.f32 0.03125, %v1099_v47 }
 0xc5c   :  { %v1105_v33 = vadd.f32 1e-06, %v1103_v31 }
 0xc5d   :  { %v1102_v48 = vpop.xlane.xlu0 %1101 }
 0xc5e   :  { %1706 = vrsqrt.f32 %v1105_v33  ;;  %v1104_v36 = vmul.f32 0.03125, %v1102_v48 }
 0xc60   :  { %v1106_v37 = vadd.f32 1e-06, %v1104_v36 }
 0xc62   :  { %1708 = vrsqrt.f32 %v1106_v37 }
 0xc68   :  { %v1707_v38 = vpop.eup %1706 }
 0xc69   :  { %v1109_v39 = vmul.f32 %v1707_v38, %v1093_v1 }
 0xc6b   :  { %1510 = vmatprep.mubr.msk.f32.mxu1 %vm42_vm0, %v1109_v39 }
 0xc6c   :  { %v1709_v40 = vpop.eup %1708 }
 0xc6d   :  { %v1110_v35 = vmul.f32 %v1709_v40, %v1094_v22 }
 0xc6f   :  { %1511 = vmatmul.mubr.msk.f32.vlgmr.msra.gmra.mrb[10].mxu1 %vm42_vm0, %v1110_v35 }
 0xd42   :  { %v1512_v60 = vpop.f32.mrb[10].mxu1 }
 0xd43   :  { %v1198_v61 = vadd.f32 %v1512_v60, %v1358_v59  ;;  %v1192_v54 = vpop.f32.mrb[11].mxu1 }
 0xd44   :  { %v1193_v62 = vadd.f32 %v1358_v59, %v1192_v54 }
 0xd45   :  { %v1204_v63 = vmul.f32 0.70710677, %v1198_v61  ;;  %v1202_v8 = vmul.f32 0.5, %v1198_v61 }
 0xd46   :  { %v1203_v2 = vmul.f32 0.70710677, %v1193_v62  ;;  %v1201_v6 = vmul.f32 0.5, %v1193_v62 }
 0xd47   :  { %1710 = verf.f32 %v1204_v63 }
 0xd48   :  { %1712 = verf.f32 %v1203_v2 }
 0xd51   :  { %v1711_v3 = vpop.eup %1710 }
 0xd52   :  { %v1713_v4 = vpop.eup %1712  ;;  %v1208_v5 = vadd.f32 1.0, %v1711_v3 }
 0xd53   :  { %v1207_v7 = vadd.f32 1.0, %v1713_v4 }
 0xd54   :  { %v1210_v10 = vmul.f32 %v1208_v5, %v1202_v8 }
 0xd55   :  { %v1209_v9 = vmul.f32 %v1207_v7, %v1201_v6 }
 0xd57   :  { %1529 = vmatprep.mubr.msk.f32.mxu0 %vm1224_vm5, %v1209_v9 }
 0xd58   :  { %1530 = vmatmul.mubr.msk.f32.vlgmr.msra.gmra.mrb[10].mxu0 %vm1224_vm5, %v1210_v10 }
 0xe2b   :  { %v1531_v32 = vpop.f32.mrb[10].mxu0 }
 0xe2c   :  { %v1303_v11 = vadd.f32 %v1531_v32, %v1361_v34  ;;  %v1297_v12 = vpop.f32.mrb[11].mxu0 }
 0xe2d   :  { %v1298_v13 = vadd.f32 %v1361_v34, %v1297_v12 }
 0xe2e   :  { %v1307_v52 = vadd.f32 %v1303_v11, %v1974_v15 }
 0xe2f   :  { %v1306_v14 = vadd.f32 %v1298_v13, %v1977_v51 }
 0xe30   :  { %1309 = vst.msk [vmem:[#allocation7 + $0x8] sm:$0xff] %vm42_vm0, %v1307_v52 }
 0xe31   :  { %1308 = vst.msk [vmem:[#allocation7] sm:$0xff] %vm42_vm0, %v1306_v14 }
 0xe32   :  { %1769 = shalt.err (!%p1766_p6)
}
 0xe33   :  { %s1770_s25 = scalar_lea.hbm %s2010_s2, 256 }
 0xe34   :  { %p1771_p7 = scmp.ne.s32.totalorder %s2010_s2, %s1770_s25  ;;  %p1774_p8 = scmp.lt.u32.totalorder %s1770_s25, %s2010_s2 }
 0xe36   :  { %p1776_p9 = pnand %p1774_p8, %p1771_p7 }
 0xe38   :  { %1779 = shalt.err (!%p1776_p9)
}
 0xe39   :  { %1321 = dma.vmem_to_hbm [thread:$0]  %s1316_s21, 256, %s2010_s2, [#allocation4], %s1787_s19, %s1787_s19, %s1788_s20  }
 0xe3a   :  { %1784 = dma.done.wait [#allocation4], 256  }
 0xe3b   :  { %1785 = vsyncadd [#allocation4], 4294967040 }
 0xe3c   :  { %1325 = vsyncpa [#allocation3], 1 }
 0xe3d   :  { %1326 = vsyncpa [#allocation6], 1 }
 0xe3e   :  { %1327 = vsyncpa [#allocation4], 1 }

</bundles_post_ra>
